<compile_context>
chip_gen: v6e
topology: v6e:2x2x1
jax: 0.10.0
libtpu: 0.0.40
codegen_flags: <defaults>
</compile_context>

<pallas_src>
import numpy as np
import jax
import jax.numpy as jnp
from jax import lax
from jax.experimental import pallas as pl
from jax.experimental.pallas import tpu as pltpu

IN_CH, OUT_CH = 1, 16
KH = KW = 2
STRIDE, PADDING = 2, 2
MIN_VALUE, MAX_VALUE = 100.0, 1000.0


def _convt_clamp_add_kernel(x_ref, w_ref, b_ref, n_ref, o_ref):
    """Fused ConvTranspose2d(1,16,2,stride=2,pad=2) + bias + clamp + noise.

    x_ref: (H_in, W_in)          SMEM  (scalar reads)
    w_ref: (Cout, 1, KH*KW)      VMEM
    b_ref: (Cout, 1, 1)          VMEM
    n_ref: (1, H_out, W_out)     VMEM  (per-pixel noise, shared over channels)
    o_ref: (Cout, H_out, W_out)  VMEM
    """
    cout, h_out, w_out = o_ref.shape
    h_in, w_in = x_ref.shape

    oh = lax.broadcasted_iota(jnp.int32, (1, h_out, w_out), 1)
    ow = lax.broadcasted_iota(jnp.int32, (1, h_out, w_out), 2)

    # Nearest-neighbour upsample of the interior of x:
    #   u[oh, ow] = x[oh//2 + 1, ow//2 + 1]
    ih = (oh >> 1) + 1
    iw = (ow >> 1) + 1
    u = jnp.zeros((1, h_out, w_out), jnp.float32)
    for a in range(1, h_in - 1):
        for b in range(1, w_in - 1):
            u = u + jnp.where((ih == a) & (iw == b), x_ref[a, b], 0.0)

    # Parity-selected weight tap: k = (oh % 2) * KW + (ow % 2)
    kidx = (oh & 1) * KW + (ow & 1)
    conv = jnp.zeros((cout, h_out, w_out), jnp.float32)
    for k in range(KH * KW):
        wk = w_ref[:, :, k:k + 1]                       # (Cout, 1, 1)
        conv = conv + jnp.where(kidx == k, wk * u, 0.0)

    acc = conv + b_ref[...]                             # + bias
    acc = jnp.clip(acc, MIN_VALUE, MAX_VALUE)           # clamp_min / clamp_max
    o_ref[...] = acc + n_ref[...]                       # + noise


def model_forward(x, weight, bias, noise):
    """x: (1, Cin, H, W) NCHW;  weight: (Cin, Cout, KH, KW) (PyTorch layout);
    bias: (Cout,);  noise: (1, 1, H_out, W_out).  Returns (1, Cout, H_out, W_out)."""
    N, Cin, H_in, W_in = x.shape
    assert N == 1 and Cin == IN_CH and H_in >= 3 and W_in >= 3
    H_out = (H_in - 1) * STRIDE - 2 * PADDING + KH
    W_out = (W_in - 1) * STRIDE - 2 * PADDING + KW

    # Free (metadata-only) reshapes; no gathers / transposes outside the kernel.
    x2d = x.reshape(H_in, W_in)
    w3 = weight.reshape(OUT_CH, 1, KH * KW)             # (1,16,2,2) -> (16,1,4)
    b3 = bias.reshape(OUT_CH, 1, 1)
    n3 = noise.reshape(1, H_out, W_out)

    out = pl.pallas_call(
        _convt_clamp_add_kernel,
        out_shape=jax.ShapeDtypeStruct((OUT_CH, H_out, W_out), jnp.float32),
        in_specs=[
            pl.BlockSpec(memory_space=pltpu.MemorySpace.SMEM),   # x  (scalars)
            pl.BlockSpec(memory_space=pltpu.MemorySpace.VMEM),   # weights
            pl.BlockSpec(memory_space=pltpu.MemorySpace.VMEM),   # bias
            pl.BlockSpec(memory_space=pltpu.MemorySpace.VMEM),   # noise
        ],
        out_specs=pl.BlockSpec(memory_space=pltpu.MemorySpace.VMEM),
        cost_estimate=pl.CostEstimate(
            flops=10 * OUT_CH * H_out * W_out,
            transcendentals=0,
            bytes_accessed=4 * (H_in * W_in + OUT_CH * (KH * KW + 1)
                                + H_out * W_out + OUT_CH * H_out * W_out),
        ),
    )(x2d, w3, b3, n3)

    # (Cout, H_out, W_out) -> (1, Cout, H_out, W_out): free reshape, no transpose.
    return out.reshape(1, OUT_CH, H_out, W_out)


def _reference(x, w, b, noise):
    x, w, b, noise = map(np.asarray, (x, w, b, noise))
    N, Cin, H_in, W_in = x.shape
    Cout = w.shape[1]
    H_out = (H_in - 1) * STRIDE - 2 * PADDING + KH
    W_out = (W_in - 1) * STRIDE - 2 * PADDING + KW
    out = np.zeros((N, Cout, H_out, W_out), np.float32)
    for n in range(N):
        for ci in range(Cin):
            for ih in range(H_in):
                for iw in range(W_in):
                    for kh in range(KH):
                        for kw in range(KW):
                            oh = ih * STRIDE - PADDING + kh
                            ow = iw * STRIDE - PADDING + kw
                            if 0 <= oh < H_out and 0 <= ow < W_out:
                                out[n, :, oh, ow] += x[n, ci, ih, iw] * w[ci, :, kh, kw]
    out += b[None, :, None, None]
    out = np.clip(out, MIN_VALUE, MAX_VALUE)
    return out + noise


if __name__ == "__main__":
    key = jax.random.PRNGKey(0)
    k_x, k_w, k_b, k_n = jax.random.split(key, 4)

    H_in = W_in = 5
    x = jax.random.normal(k_x, (1, IN_CH, H_in, W_in), dtype=jnp.float32)

    # Deterministic parameter init (PyTorch-style uniform(-k, k), k=1/sqrt(fan_in)).
    fan_in = IN_CH * KH * KW
    bound = 1.0 / np.sqrt(fan_in)
    weight = jax.random.uniform(k_w, (IN_CH, OUT_CH, KH, KW),
                                minval=-bound, maxval=bound, dtype=jnp.float32)
    bias = jax.random.uniform(k_b, (OUT_CH,),
                              minval=-bound, maxval=bound, dtype=jnp.float32)

    H_out = (H_in - 1) * STRIDE - 2 * PADDING + KH
    W_out = (W_in - 1) * STRIDE - 2 * PADDING + KW
    noise = jax.random.uniform(k_n, (1, 1, H_out, W_out), dtype=jnp.float32)

    fwd = jax.jit(model_forward)
    out = fwd(x, weight, bias, noise)
    out = jax.block_until_ready(out)

    ref = _reference(x, weight, bias, noise)
    np.testing.assert_allclose(np.asarray(out), ref, rtol=1e-5, atol=1e-5)

    print("KERNEL_OK")
</pallas_src>

<mosaic_0001>
module attributes {stable_mosaic.version = 11 : i64} {
  func.func @_convt_clamp_add_kernel(%arg0: memref<5x5xf32, #tpu.memory_space<smem>>, %arg1: memref<16x1x4xf32, #tpu.memory_space<vmem>>, %arg2: memref<16x1x1xf32, #tpu.memory_space<vmem>>, %arg3: memref<1x6x6xf32, #tpu.memory_space<vmem>>, %arg4: memref<16x6x6xf32, #tpu.memory_space<vmem>>) attributes {dimension_semantics = [], scalar_prefetch = 0 : i64, scratch_operands = 0 : i64, tpu.core_type = #tpu.core_type<tc>} {
    %0 = tpu.iota {dimensions = array<i32: 1>} : vector<1x6x6xi32>
    %1 = tpu.iota {dimensions = array<i32: 2>} : vector<1x6x6xi32>
    %c1_i32 = arith.constant 1 : i32
    %2 = vector.broadcast %c1_i32 : i32 to vector<1x6x6xi32>
    %3 = arith.shrsi %0, %2 : vector<1x6x6xi32>
    %c1_i32_0 = arith.constant 1 : i32
    %4 = vector.broadcast %c1_i32_0 : i32 to vector<1x6x6xi32>
    %5 = arith.addi %3, %4 : vector<1x6x6xi32>
    %c1_i32_1 = arith.constant 1 : i32
    %6 = vector.broadcast %c1_i32_1 : i32 to vector<1x6x6xi32>
    %7 = arith.shrsi %1, %6 : vector<1x6x6xi32>
    %c1_i32_2 = arith.constant 1 : i32
    %8 = vector.broadcast %c1_i32_2 : i32 to vector<1x6x6xi32>
    %9 = arith.addi %7, %8 : vector<1x6x6xi32>
    %cst = arith.constant 0.000000e+00 : f32
    %10 = vector.broadcast %cst : f32 to vector<1x6x6xf32>
    %c1_i32_3 = arith.constant 1 : i32
    %11 = vector.broadcast %c1_i32_3 : i32 to vector<1x6x6xi32>
    %12 = arith.cmpi eq, %5, %11 : vector<1x6x6xi32>
    %c1_i32_4 = arith.constant 1 : i32
    %13 = vector.broadcast %c1_i32_4 : i32 to vector<1x6x6xi32>
    %14 = arith.cmpi eq, %9, %13 : vector<1x6x6xi32>
    %15 = arith.andi %12, %14 : vector<1x6x6xi1>
    %c1 = arith.constant 1 : index
    %c1_5 = arith.constant 1 : index
    %16 = memref.load %arg0[%c1, %c1_5] : memref<5x5xf32, #tpu.memory_space<smem>>
    %cst_6 = arith.constant 0.000000e+00 : f32
    %17 = vector.broadcast %16 : f32 to vector<1x6x6xf32>
    %18 = vector.broadcast %cst_6 : f32 to vector<1x6x6xf32>
    %19 = arith.select %15, %17, %18 : vector<1x6x6xi1>, vector<1x6x6xf32>
    %20 = arith.addf %10, %19 : vector<1x6x6xf32>
    %c1_i32_7 = arith.constant 1 : i32
    %21 = vector.broadcast %c1_i32_7 : i32 to vector<1x6x6xi32>
    %22 = arith.cmpi eq, %5, %21 : vector<1x6x6xi32>
    %c2_i32 = arith.constant 2 : i32
    %23 = vector.broadcast %c2_i32 : i32 to vector<1x6x6xi32>
    %24 = arith.cmpi eq, %9, %23 : vector<1x6x6xi32>
    %25 = arith.andi %22, %24 : vector<1x6x6xi1>
    %c1_8 = arith.constant 1 : index
    %c2 = arith.constant 2 : index
    %26 = memref.load %arg0[%c1_8, %c2] : memref<5x5xf32, #tpu.memory_space<smem>>
    %cst_9 = arith.constant 0.000000e+00 : f32
    %27 = vector.broadcast %26 : f32 to vector<1x6x6xf32>
    %28 = vector.broadcast %cst_9 : f32 to vector<1x6x6xf32>
    %29 = arith.select %25, %27, %28 : vector<1x6x6xi1>, vector<1x6x6xf32>
    %30 = arith.addf %20, %29 : vector<1x6x6xf32>
    %c1_i32_10 = arith.constant 1 : i32
    %31 = vector.broadcast %c1_i32_10 : i32 to vector<1x6x6xi32>
    %32 = arith.cmpi eq, %5, %31 : vector<1x6x6xi32>
    %c3_i32 = arith.constant 3 : i32
    %33 = vector.broadcast %c3_i32 : i32 to vector<1x6x6xi32>
    %34 = arith.cmpi eq, %9, %33 : vector<1x6x6xi32>
    %35 = arith.andi %32, %34 : vector<1x6x6xi1>
    %c1_11 = arith.constant 1 : index
    %c3 = arith.constant 3 : index
    %36 = memref.load %arg0[%c1_11, %c3] : memref<5x5xf32, #tpu.memory_space<smem>>
    %cst_12 = arith.constant 0.000000e+00 : f32
    %37 = vector.broadcast %36 : f32 to vector<1x6x6xf32>
    %38 = vector.broadcast %cst_12 : f32 to vector<1x6x6xf32>
    %39 = arith.select %35, %37, %38 : vector<1x6x6xi1>, vector<1x6x6xf32>
    %40 = arith.addf %30, %39 : vector<1x6x6xf32>
    %c2_i32_13 = arith.constant 2 : i32
    %41 = vector.broadcast %c2_i32_13 : i32 to vector<1x6x6xi32>
    %42 = arith.cmpi eq, %5, %41 : vector<1x6x6xi32>
    %c1_i32_14 = arith.constant 1 : i32
    %43 = vector.broadcast %c1_i32_14 : i32 to vector<1x6x6xi32>
    %44 = arith.cmpi eq, %9, %43 : vector<1x6x6xi32>
    %45 = arith.andi %42, %44 : vector<1x6x6xi1>
    %c2_15 = arith.constant 2 : index
    %c1_16 = arith.constant 1 : index
    %46 = memref.load %arg0[%c2_15, %c1_16] : memref<5x5xf32, #tpu.memory_space<smem>>
    %cst_17 = arith.constant 0.000000e+00 : f32
    %47 = vector.broadcast %46 : f32 to vector<1x6x6xf32>
    %48 = vector.broadcast %cst_17 : f32 to vector<1x6x6xf32>
    %49 = arith.select %45, %47, %48 : vector<1x6x6xi1>, vector<1x6x6xf32>
    %50 = arith.addf %40, %49 : vector<1x6x6xf32>
    %c2_i32_18 = arith.constant 2 : i32
    %51 = vector.broadcast %c2_i32_18 : i32 to vector<1x6x6xi32>
    %52 = arith.cmpi eq, %5, %51 : vector<1x6x6xi32>
    %c2_i32_19 = arith.constant 2 : i32
    %53 = vector.broadcast %c2_i32_19 : i32 to vector<1x6x6xi32>
    %54 = arith.cmpi eq, %9, %53 : vector<1x6x6xi32>
    %55 = arith.andi %52, %54 : vector<1x6x6xi1>
    %c2_20 = arith.constant 2 : index
    %c2_21 = arith.constant 2 : index
    %56 = memref.load %arg0[%c2_20, %c2_21] : memref<5x5xf32, #tpu.memory_space<smem>>
    %cst_22 = arith.constant 0.000000e+00 : f32
    %57 = vector.broadcast %56 : f32 to vector<1x6x6xf32>
    %58 = vector.broadcast %cst_22 : f32 to vector<1x6x6xf32>
    %59 = arith.select %55, %57, %58 : vector<1x6x6xi1>, vector<1x6x6xf32>
    %60 = arith.addf %50, %59 : vector<1x6x6xf32>
    %c2_i32_23 = arith.constant 2 : i32
    %61 = vector.broadcast %c2_i32_23 : i32 to vector<1x6x6xi32>
    %62 = arith.cmpi eq, %5, %61 : vector<1x6x6xi32>
    %c3_i32_24 = arith.constant 3 : i32
    %63 = vector.broadcast %c3_i32_24 : i32 to vector<1x6x6xi32>
    %64 = arith.cmpi eq, %9, %63 : vector<1x6x6xi32>
    %65 = arith.andi %62, %64 : vector<1x6x6xi1>
    %c2_25 = arith.constant 2 : index
    %c3_26 = arith.constant 3 : index
    %66 = memref.load %arg0[%c2_25, %c3_26] : memref<5x5xf32, #tpu.memory_space<smem>>
    %cst_27 = arith.constant 0.000000e+00 : f32
    %67 = vector.broadcast %66 : f32 to vector<1x6x6xf32>
    %68 = vector.broadcast %cst_27 : f32 to vector<1x6x6xf32>
    %69 = arith.select %65, %67, %68 : vector<1x6x6xi1>, vector<1x6x6xf32>
    %70 = arith.addf %60, %69 : vector<1x6x6xf32>
    %c3_i32_28 = arith.constant 3 : i32
    %71 = vector.broadcast %c3_i32_28 : i32 to vector<1x6x6xi32>
    %72 = arith.cmpi eq, %5, %71 : vector<1x6x6xi32>
    %c1_i32_29 = arith.constant 1 : i32
    %73 = vector.broadcast %c1_i32_29 : i32 to vector<1x6x6xi32>
    %74 = arith.cmpi eq, %9, %73 : vector<1x6x6xi32>
    %75 = arith.andi %72, %74 : vector<1x6x6xi1>
    %c3_30 = arith.constant 3 : index
    %c1_31 = arith.constant 1 : index
    %76 = memref.load %arg0[%c3_30, %c1_31] : memref<5x5xf32, #tpu.memory_space<smem>>
    %cst_32 = arith.constant 0.000000e+00 : f32
    %77 = vector.broadcast %76 : f32 to vector<1x6x6xf32>
    %78 = vector.broadcast %cst_32 : f32 to vector<1x6x6xf32>
    %79 = arith.select %75, %77, %78 : vector<1x6x6xi1>, vector<1x6x6xf32>
    %80 = arith.addf %70, %79 : vector<1x6x6xf32>
    %c3_i32_33 = arith.constant 3 : i32
    %81 = vector.broadcast %c3_i32_33 : i32 to vector<1x6x6xi32>
    %82 = arith.cmpi eq, %5, %81 : vector<1x6x6xi32>
    %c2_i32_34 = arith.constant 2 : i32
    %83 = vector.broadcast %c2_i32_34 : i32 to vector<1x6x6xi32>
    %84 = arith.cmpi eq, %9, %83 : vector<1x6x6xi32>
    %85 = arith.andi %82, %84 : vector<1x6x6xi1>
    %c3_35 = arith.constant 3 : index
    %c2_36 = arith.constant 2 : index
    %86 = memref.load %arg0[%c3_35, %c2_36] : memref<5x5xf32, #tpu.memory_space<smem>>
    %cst_37 = arith.constant 0.000000e+00 : f32
    %87 = vector.broadcast %86 : f32 to vector<1x6x6xf32>
    %88 = vector.broadcast %cst_37 : f32 to vector<1x6x6xf32>
    %89 = arith.select %85, %87, %88 : vector<1x6x6xi1>, vector<1x6x6xf32>
    %90 = arith.addf %80, %89 : vector<1x6x6xf32>
    %c3_i32_38 = arith.constant 3 : i32
    %91 = vector.broadcast %c3_i32_38 : i32 to vector<1x6x6xi32>
    %92 = arith.cmpi eq, %5, %91 : vector<1x6x6xi32>
    %c3_i32_39 = arith.constant 3 : i32
    %93 = vector.broadcast %c3_i32_39 : i32 to vector<1x6x6xi32>
    %94 = arith.cmpi eq, %9, %93 : vector<1x6x6xi32>
    %95 = arith.andi %92, %94 : vector<1x6x6xi1>
    %c3_40 = arith.constant 3 : index
    %c3_41 = arith.constant 3 : index
    %96 = memref.load %arg0[%c3_40, %c3_41] : memref<5x5xf32, #tpu.memory_space<smem>>
    %cst_42 = arith.constant 0.000000e+00 : f32
    %97 = vector.broadcast %96 : f32 to vector<1x6x6xf32>
    %98 = vector.broadcast %cst_42 : f32 to vector<1x6x6xf32>
    %99 = arith.select %95, %97, %98 : vector<1x6x6xi1>, vector<1x6x6xf32>
    %100 = arith.addf %90, %99 : vector<1x6x6xf32>
    %c1_i32_43 = arith.constant 1 : i32
    %101 = vector.broadcast %c1_i32_43 : i32 to vector<1x6x6xi32>
    %102 = arith.andi %0, %101 : vector<1x6x6xi32>
    %c2_i32_44 = arith.constant 2 : i32
    %103 = vector.broadcast %c2_i32_44 : i32 to vector<1x6x6xi32>
    %104 = arith.muli %102, %103 : vector<1x6x6xi32>
    %c1_i32_45 = arith.constant 1 : i32
    %105 = vector.broadcast %c1_i32_45 : i32 to vector<1x6x6xi32>
    %106 = arith.andi %1, %105 : vector<1x6x6xi32>
    %107 = arith.addi %104, %106 : vector<1x6x6xi32>
    %cst_46 = arith.constant 0.000000e+00 : f32
    %108 = vector.broadcast %cst_46 : f32 to vector<16x6x6xf32>
    %c0 = arith.constant 0 : index
    %c0_47 = arith.constant 0 : index
    %c0_48 = arith.constant 0 : index
    %109 = vector.load %arg1[%c0, %c0_47, %c0_48] : memref<16x1x4xf32, #tpu.memory_space<vmem>>, vector<16x1x1xf32>
    %c0_i32 = arith.constant 0 : i32
    %110 = vector.broadcast %c0_i32 : i32 to vector<1x6x6xi32>
    %111 = arith.cmpi eq, %107, %110 : vector<1x6x6xi32>
    %112 = vector.broadcast %109 : vector<16x1x1xf32> to vector<16x6x6xf32>
    %113 = vector.broadcast %100 : vector<1x6x6xf32> to vector<16x6x6xf32>
    %114 = arith.mulf %112, %113 : vector<16x6x6xf32>
    %cst_49 = arith.constant 0.000000e+00 : f32
    %115 = vector.shape_cast %111 : vector<1x6x6xi1> to vector<1x6x6xi1>
    %116 = vector.broadcast %115 : vector<1x6x6xi1> to vector<16x6x6xi1>
    %117 = vector.broadcast %cst_49 : f32 to vector<16x6x6xf32>
    %118 = arith.select %116, %114, %117 : vector<16x6x6xi1>, vector<16x6x6xf32>
    %119 = arith.addf %108, %118 : vector<16x6x6xf32>
    %c0_50 = arith.constant 0 : index
    %c0_51 = arith.constant 0 : index
    %c1_52 = arith.constant 1 : index
    %120 = vector.load %arg1[%c0_50, %c0_51, %c1_52] : memref<16x1x4xf32, #tpu.memory_space<vmem>>, vector<16x1x1xf32>
    %c1_i32_53 = arith.constant 1 : i32
    %121 = vector.broadcast %c1_i32_53 : i32 to vector<1x6x6xi32>
    %122 = arith.cmpi eq, %107, %121 : vector<1x6x6xi32>
    %123 = vector.broadcast %120 : vector<16x1x1xf32> to vector<16x6x6xf32>
    %124 = vector.broadcast %100 : vector<1x6x6xf32> to vector<16x6x6xf32>
    %125 = arith.mulf %123, %124 : vector<16x6x6xf32>
    %cst_54 = arith.constant 0.000000e+00 : f32
    %126 = vector.shape_cast %122 : vector<1x6x6xi1> to vector<1x6x6xi1>
    %127 = vector.broadcast %126 : vector<1x6x6xi1> to vector<16x6x6xi1>
    %128 = vector.broadcast %cst_54 : f32 to vector<16x6x6xf32>
    %129 = arith.select %127, %125, %128 : vector<16x6x6xi1>, vector<16x6x6xf32>
    %130 = arith.addf %119, %129 : vector<16x6x6xf32>
    %c0_55 = arith.constant 0 : index
    %c0_56 = arith.constant 0 : index
    %c2_57 = arith.constant 2 : index
    %131 = vector.load %arg1[%c0_55, %c0_56, %c2_57] : memref<16x1x4xf32, #tpu.memory_space<vmem>>, vector<16x1x1xf32>
    %c2_i32_58 = arith.constant 2 : i32
    %132 = vector.broadcast %c2_i32_58 : i32 to vector<1x6x6xi32>
    %133 = arith.cmpi eq, %107, %132 : vector<1x6x6xi32>
    %134 = vector.broadcast %131 : vector<16x1x1xf32> to vector<16x6x6xf32>
    %135 = vector.broadcast %100 : vector<1x6x6xf32> to vector<16x6x6xf32>
    %136 = arith.mulf %134, %135 : vector<16x6x6xf32>
    %cst_59 = arith.constant 0.000000e+00 : f32
    %137 = vector.shape_cast %133 : vector<1x6x6xi1> to vector<1x6x6xi1>
    %138 = vector.broadcast %137 : vector<1x6x6xi1> to vector<16x6x6xi1>
    %139 = vector.broadcast %cst_59 : f32 to vector<16x6x6xf32>
    %140 = arith.select %138, %136, %139 : vector<16x6x6xi1>, vector<16x6x6xf32>
    %141 = arith.addf %130, %140 : vector<16x6x6xf32>
    %c0_60 = arith.constant 0 : index
    %c0_61 = arith.constant 0 : index
    %c3_62 = arith.constant 3 : index
    %142 = vector.load %arg1[%c0_60, %c0_61, %c3_62] : memref<16x1x4xf32, #tpu.memory_space<vmem>>, vector<16x1x1xf32>
    %c3_i32_63 = arith.constant 3 : i32
    %143 = vector.broadcast %c3_i32_63 : i32 to vector<1x6x6xi32>
    %144 = arith.cmpi eq, %107, %143 : vector<1x6x6xi32>
    %145 = vector.broadcast %142 : vector<16x1x1xf32> to vector<16x6x6xf32>
    %146 = vector.broadcast %100 : vector<1x6x6xf32> to vector<16x6x6xf32>
    %147 = arith.mulf %145, %146 : vector<16x6x6xf32>
    %cst_64 = arith.constant 0.000000e+00 : f32
    %148 = vector.shape_cast %144 : vector<1x6x6xi1> to vector<1x6x6xi1>
    %149 = vector.broadcast %148 : vector<1x6x6xi1> to vector<16x6x6xi1>
    %150 = vector.broadcast %cst_64 : f32 to vector<16x6x6xf32>
    %151 = arith.select %149, %147, %150 : vector<16x6x6xi1>, vector<16x6x6xf32>
    %152 = arith.addf %141, %151 : vector<16x6x6xf32>
    %c0_65 = arith.constant 0 : index
    %c0_66 = arith.constant 0 : index
    %c0_67 = arith.constant 0 : index
    %153 = vector.load %arg2[%c0_65, %c0_66, %c0_67] : memref<16x1x1xf32, #tpu.memory_space<vmem>>, vector<16x1x1xf32>
    %154 = vector.broadcast %153 : vector<16x1x1xf32> to vector<16x6x6xf32>
    %155 = arith.addf %152, %154 : vector<16x6x6xf32>
    %cst_68 = arith.constant 1.000000e+02 : f32
    %cst_69 = arith.constant 1.000000e+03 : f32
    %156 = vector.broadcast %cst_68 : f32 to vector<16x6x6xf32>
    %157 = arith.maximumf %156, %155 : vector<16x6x6xf32>
    %158 = vector.broadcast %cst_69 : f32 to vector<16x6x6xf32>
    %159 = arith.minimumf %158, %157 : vector<16x6x6xf32>
    %c0_70 = arith.constant 0 : index
    %c0_71 = arith.constant 0 : index
    %c0_72 = arith.constant 0 : index
    %160 = vector.load %arg3[%c0_70, %c0_71, %c0_72] : memref<1x6x6xf32, #tpu.memory_space<vmem>>, vector<1x6x6xf32>
    %161 = vector.broadcast %160 : vector<1x6x6xf32> to vector<16x6x6xf32>
    %162 = arith.addf %159, %161 : vector<16x6x6xf32>
    %c0_73 = arith.constant 0 : index
    %c0_74 = arith.constant 0 : index
    %c0_75 = arith.constant 0 : index
    %163 = vector.load %arg4[%c0_73, %c0_74, %c0_75] : memref<16x6x6xf32, #tpu.memory_space<vmem>>, vector<16x6x6xf32>
    tpu.vector_store %arg4[%c0_73, %c0_74, %c0_75], %162 {strides = array<i32>} : memref<16x6x6xf32, #tpu.memory_space<vmem>>, vector<16x6x6xf32>,
    return
  }
}

</mosaic_0001>

<bundles_post_ra>
// kernel: model_forward.1
= control target key start
LH: loop header
LB: loop body
LE: loop exit
PB: predicated region body
PF: predicated region fallthrough
CT: control target
= control target key end

     0   :  { %9 = vsyncpa [#allocation3], 0  ;;  %s1616_s0 = inlined_call_operand.vmem [shape: f32[5,5], index: 0, kind: input, shape index: {}]   ;;  %s1617_s1 = inlined_call_operand.vmem [shape: f32[16,1,4], index: 1, kind: input, shape index: {}]   ;;  %s1618_s2 = inlined_call_operand.vmem [shape: f32[16,1,1], index: 2, kind: input, shape index: {}]   ;;  %s1619_s3 = inlined_call_operand.vmem [shape: f32[1,6,6], index: 3, kind: input, shape index: {}]   ;;  %s1620_s4 = inlined_call_operand.vmem [shape: f32[16,6,6], index: 4, kind: output, shape index: {}]  }
   0x1   :  { %s16_s17 = sshll.u32 %s1616_s0, 4  ;;  %s17_s17 = int_to_ptr.vmem [resolvable:$true] %s16_s17 }
   0x2   :  { %s951_s18 = scalar_lea.vmem %s17_s17, 128  ;;  %p956_p1 = scmp.lt.s32.totalorder %s17_s17, %s17_s17 }
   0x3   :  { %p952_p0 = scmp.ne.s32.totalorder %s17_s17, %s951_s18  ;;  %p957_p2 = scmp.lt.s32.totalorder %s951_s18, %s951_s18 }
   0x5   :  { %p958_p3 = por %p957_p2, %p956_p1 }
   0x7   :  { %p959_p4 = pnand %p958_p3, %p952_p0 }
   0x9   :  { %962 = shalt.err (!%p959_p4)
}
   0xa   :  { %s965_s19 = smov [#allocation2]  }
   0xb   :  { %19 = dma.vmem_to_smem %s17_s17, 128, %s965_s19, [#allocation3]  }
   0xc   :  { %963 = dma.done.wait [#allocation3], 128  }
   0xd   :  { %964 = vsyncadd [#allocation3], 4294967168 }
   0xe   :  { %29 = sfence }
   0xf   :  { %v1001_v0 = vld [vmem:[%s1617_s1 + $0x2] ss:$0 sm:$0xff]  ;;  %v1006_v1 = vld [vmem:[%s1617_s1] ss:$0 sm:$0xff]  ;;  %v966_v2 = vmov 1   ;;  %v967_v3 = vmov 0   ;;  %v30_v20 = vlaneseq }
  0x10   :  { %943 = vset.pattern.permute.xlu0 %v966_v2  ;;  %942 = vset.pattern.permute.xlu1 %v967_v3  ;;  %v908_v4 = vld [vmem:[%s1617_s1 + $0x3] ss:$0 sm:$0xff]  ;;  %v910_v5 = vld [vmem:[%s1617_s1 + $0x5] ss:$0 sm:$0xff]  ;;  %v912_v6 = vld [vmem:[%s1617_s1 + $0x7] ss:$0 sm:$0xff] }
  0x11   :  { %199 = vperm.xlu1 %942, %v1001_v0   ;;  %306 = vperm.xlu0 %943, %v1006_v1   ;;  %v914_v7 = vld [vmem:[%s1617_s1 + $0x9] ss:$0 sm:$0xff]  ;;  %v916_v8 = vld [vmem:[%s1617_s1 + $0xb] ss:$0 sm:$0xff]  ;;  %v1029_v9 = vld [vmem:[%s1617_s1 + $0xd] ss:$0 sm:$0xff] }
  0x12   :  { %v1036_v10 = vld [vmem:[%s1617_s1 + $0xf] ss:$0 sm:$0xff]  ;;  %v1043_v11 = vld [vmem:[%s1617_s1 + $0x1] ss:$0 sm:$0xff]  ;;  %v968_v12 = vmov 2   ;;  %v969_v19 = vmov 3  }
  0x13   :  { %v1050_v13 = vld [vmem:[%s1617_s1 + $0x4] ss:$0 sm:$0xff]  ;;  %v1057_v14 = vld [vmem:[%s1617_s1 + $0x6] ss:$0 sm:$0xff]  ;;  %v1064_v15 = vld [vmem:[%s1617_s1 + $0x8] ss:$0 sm:$0xff] }
  0x14   :  { %v1071_v16 = vld [vmem:[%s1617_s1 + $0xa] ss:$0 sm:$0xff]  ;;  %v1078_v17 = vld [vmem:[%s1617_s1 + $0xc] ss:$0 sm:$0xff]  ;;  %v1085_v18 = vld [vmem:[%s1617_s1 + $0xe] ss:$0 sm:$0xff] }
  0x15   :  { %203 = vperm.xlu1 %942, %v908_v4   ;;  %318 = vperm.xlu0 %943, %v908_v4   ;;  %v1093_v21 = vshrl.u32 %v30_v20, 7  ;;  %v1095_v22 = vand.u32 127, %v30_v20  ;;  %s896_s1 = sld [smem:[#allocation2 + $0x81]]  ;;  %v922_v57 = vld [vmem:[%s1618_s2 + $0x1] ss:$0 sm:$0xff] }
  0x16   :  { %s897_s24 = sld [smem:[#allocation2 + $0x82]] }
  0x17   :  { %v34_v23 = vshra.s32 %v1093_v21, 1  ;;  %v36_v24 = vshra.s32 %v1095_v22, 1  ;;  %s898_s25 = sld [smem:[#allocation2 + $0x83]]  ;;  %v89_v47 = vand.u32 1, %v1093_v21  ;;  %v91_v52 = vand.u32 1, %v1095_v22 }
  0x18   :  { %s899_s26 = sld [smem:[#allocation2 + $0x101]] }
  0x19   :  { %211 = vperm.xlu1 %942, %v910_v5   ;;  %326 = vperm.xlu0 %943, %v910_v5   ;;  %v1099_v25 = vadd.s32 1, %v34_v23  ;;  %v1101_v26 = vadd.s32 1, %v36_v24  ;;  %s900_s27 = sld [smem:[#allocation2 + $0x102]]  ;;  %v90_v51 = vmul.u32 2, %v89_v47 }
  0x1a   :  { %s901_s28 = sld [smem:[#allocation2 + $0x103]] }
  0x1b   :  { %vm38_vm0 = vcmp.eq.s32.totalorder %v1099_v25, 1  ;;  %vm39_vm1 = vcmp.eq.s32.totalorder %v1101_v26, 1  ;;  %vm45_vm2 = vcmp.eq.s32.totalorder %v1101_v26, 2  ;;  %v42_v27 = vstv %s896_s1  ;;  %s902_s29 = sld [smem:[#allocation2 + $0x181]] }
  0x1c   :  { %vm40_vm3 = vmand %vm38_vm0, %vm39_vm1  ;;  %v48_v28 = vstv %s897_s24  ;;  %vm51_vm5 = vcmp.eq.s32.totalorder %v1101_v26, 3  ;;  %vm57_vm7 = vcmp.eq.s32.totalorder %v1099_v25, 2  ;;  %s903_s30 = sld [smem:[#allocation2 + $0x182]]  ;;  %vm73_vm11 = vcmp.eq.s32.totalorder %v1099_v25, 3  ;;  %v931_v26 = vld [vmem:[%s1618_s2 + $0xa] ss:$0 sm:$0xff] }
  0x1d   :  { %219 = vperm.xlu1 %942, %v912_v6   ;;  %334 = vperm.xlu0 %943, %v912_v6   ;;  %vm46_vm4 = vmand %vm38_vm0, %vm45_vm2  ;;  %v43_v29 = vsel %vm40_vm3, %v42_v27, 0.0  ;;  %v54_v31 = vstv %s898_s25  ;;  %s904_s5 = sld [smem:[#allocation2 + $0x183]]  ;;  %v1173_v58 = vadd.s32 %v91_v52, %v90_v51  ;;  %v924_v27 = vld [vmem:[%s1618_s2 + $0x3] ss:$0 sm:$0xff]  ;;  %vm874_vm3 = vcmask 46080  }
  0x1e   :  { %v49_v30 = vsel %vm46_vm4, %v48_v28, 0.0  ;;  %vm52_vm6 = vmand %vm38_vm0, %vm51_vm5  ;;  %v60_v34 = vstv %s899_s26 }
  0x1f   :  { %v50_v32 = vadd.f32 %v49_v30, %v43_v29  ;;  %v55_v33 = vsel %vm52_vm6, %v54_v31, 0.0  ;;  %vm58_vm8 = vmand %vm57_vm7, %vm39_vm1  ;;  %v65_v37 = vstv %s900_s27  ;;  %vm304_vm15 = vcmp.eq.s32.totalorder %v1173_v58, 1 }
  0x20   :  { %v61_v36 = vsel %vm58_vm8, %v60_v34, 0.0  ;;  %vm63_vm9 = vmand %vm57_vm7, %vm45_vm2  ;;  %v70_v40 = vstv %s901_s28  ;;  %vm109_vm0 = vcmp.eq.s32.totalorder %v1173_v58, 0 }
  0x21   :  { %227 = vperm.xlu1 %942, %v914_v7   ;;  %342 = vperm.xlu0 %943, %v914_v7   ;;  %v56_v35 = vadd.f32 %v55_v33, %v50_v32  ;;  %v66_v39 = vsel %vm63_vm9, %v65_v37, 0.0  ;;  %vm68_vm10 = vmand %vm57_vm7, %vm51_vm5  ;;  %v76_v43 = vstv %s902_s29 }
  0x22   :  { %v71_v42 = vsel %vm68_vm10, %v70_v40, 0.0  ;;  %vm74_vm12 = vmand %vm73_vm11, %vm39_vm1  ;;  %v81_v46 = vstv %s903_s30  ;;  %vm534_vm1 = vcmp.eq.s32.totalorder %v1173_v58, 3 }
  0x23   :  { %v62_v38 = vadd.f32 %v61_v36, %v56_v35  ;;  %v77_v45 = vsel %vm74_vm12, %v76_v43, 0.0  ;;  %vm79_vm13 = vmand %vm73_vm11, %vm45_vm2  ;;  %v86_v50 = vstv %s904_s5  ;;  %v933_v35 = vld [vmem:[%s1618_s2 + $0xc] ss:$0 sm:$0xff]  ;;  %v926_v36 = vld [vmem:[%s1618_s2 + $0x5] ss:$0 sm:$0xff]  ;;  %vm419_vm2 = vcmp.eq.s32.totalorder %v1173_v58, 2 }
  0x24   :  { %v82_v49 = vsel %vm79_vm13, %v81_v46, 0.0  ;;  %vm84_vm14 = vmand %vm73_vm11, %vm51_vm5 }
  0x25   :  { %235 = vperm.xlu1 %942, %v916_v8   ;;  %350 = vperm.xlu0 %943, %v916_v8   ;;  %v67_v41 = vadd.f32 %v66_v39, %v62_v38  ;;  %v87_v55 = vsel %vm84_vm14, %v86_v50, 0.0 }
  0x27   :  { %v72_v44 = vadd.f32 %v71_v42, %v67_v41 }
  0x29   :  { %243 = vperm.xlu1 %942, %v1029_v9   ;;  %358 = vperm.xlu0 %943, %v1029_v9   ;;  %v78_v48 = vadd.f32 %v77_v45, %v72_v44  ;;  %v935_v44 = vld [vmem:[%s1618_s2 + $0xe] ss:$0 sm:$0xff]  ;;  %v928_v45 = vld [vmem:[%s1618_s2 + $0x7] ss:$0 sm:$0xff] }
  0x2b   :  { %v83_v53 = vadd.f32 %v82_v49, %v78_v48 }
  0x2d   :  { %251 = vperm.xlu1 %942, %v1036_v10   ;;  %366 = vperm.xlu0 %943, %v1036_v10   ;;  %v1175_v59 = vadd.f32 %v87_v55, %v83_v53  ;;  %v930_v53 = vld [vmem:[%s1618_s2 + $0x9] ss:$0 sm:$0xff] }
  0x31   :  { %944 = vset.pattern.permute.xlu1 %v966_v2  ;;  %946 = vset.pattern.permute.xlu0 %v968_v12 }
  0x32   :  { %310 = vperm.xlu1 %944, %v1043_v11   ;;  %425 = vperm.xlu0 %946, %v1043_v11  }
  0x36   :  { %314 = vperm.xlu1 %944, %v1001_v0   ;;  %437 = vperm.xlu0 %946, %v1050_v13  }
  0x3a   :  { %322 = vperm.xlu1 %944, %v1050_v13   ;;  %445 = vperm.xlu0 %946, %v1057_v14  }
  0x3e   :  { %330 = vperm.xlu1 %944, %v1057_v14   ;;  %453 = vperm.xlu0 %946, %v1064_v15  }
  0x42   :  { %338 = vperm.xlu1 %944, %v1064_v15   ;;  %461 = vperm.xlu0 %946, %v1071_v16  }
  0x46   :  { %346 = vperm.xlu1 %944, %v1071_v16   ;;  %469 = vperm.xlu0 %946, %v1078_v17  }
  0x4a   :  { %354 = vperm.xlu1 %944, %v1078_v17   ;;  %477 = vperm.xlu0 %946, %v1085_v18  }
  0x4e   :  { %362 = vperm.xlu1 %944, %v1085_v18   ;;  %947 = vset.pattern.permute.xlu0 %v969_v19 }
  0x4f   :  { %536 = vperm.xlu0 %947, %v1006_v1  }
  0x52   :  { %945 = vset.pattern.permute.xlu1 %v968_v12 }
  0x53   :  { %421 = vperm.xlu1 %945, %v1006_v1   ;;  %548 = vperm.xlu0 %947, %v908_v4  }
  0x57   :  { %429 = vperm.xlu1 %945, %v1001_v0   ;;  %556 = vperm.xlu0 %947, %v910_v5  }
  0x5b   :  { %433 = vperm.xlu1 %945, %v908_v4   ;;  %564 = vperm.xlu0 %947, %v912_v6  }
  0x5f   :  { %441 = vperm.xlu1 %945, %v910_v5   ;;  %572 = vperm.xlu0 %947, %v914_v7  }
  0x63   :  { %449 = vperm.xlu1 %945, %v912_v6   ;;  %580 = vperm.xlu0 %947, %v916_v8  }
  0x67   :  { %457 = vperm.xlu1 %945, %v914_v7   ;;  %588 = vperm.xlu0 %947, %v1029_v9  }
  0x6b   :  { %465 = vperm.xlu1 %945, %v916_v8   ;;  %596 = vperm.xlu0 %947, %v1036_v10  }
  0x6f   :  { %473 = vperm.xlu1 %945, %v1029_v9   ;;  %949 = vset.pattern.permute.xlu0 %v967_v3  ;;  %v927_v9 = vld [vmem:[%s1618_s2 + $0x6] ss:$0 sm:$0xff] }
  0x70   :  { %191 = vperm.xlu0 %949, %v1006_v1  }
  0x73   :  { %481 = vperm.xlu1 %945, %v1036_v10   ;;  %v921_v10 = vld [vmem:[%s1618_s2] ss:$0 sm:$0xff] }
  0x74   :  { %195 = vperm.xlu0 %949, %v1043_v11  }
  0x77   :  { %948 = vset.pattern.permute.xlu1 %v969_v19  ;;  %v923_v19 = vld [vmem:[%s1618_s2 + $0x2] ss:$0 sm:$0xff] }
  0x78   :  { %540 = vperm.xlu1 %948, %v1043_v11   ;;  %207 = vperm.xlu0 %949, %v1050_v13  }
  0x7c   :  { %544 = vperm.xlu1 %948, %v1001_v0   ;;  %215 = vperm.xlu0 %949, %v1057_v14   ;;  %v925_v0 = vld [vmem:[%s1618_s2 + $0x4] ss:$0 sm:$0xff] }
  0x80   :  { %552 = vperm.xlu1 %948, %v1050_v13   ;;  %223 = vperm.xlu0 %949, %v1064_v15  }
  0x84   :  { %560 = vperm.xlu1 %948, %v1057_v14   ;;  %231 = vperm.xlu0 %949, %v1071_v16  }
  0x88   :  { %568 = vperm.xlu1 %948, %v1064_v15   ;;  %239 = vperm.xlu0 %949, %v1078_v17  }
  0x8c   :  { %v1164_v54 = vpop.permute.xlu1 %199  ;;  %576 = vperm.xlu1 %948, %v1071_v16   ;;  %247 = vperm.xlu0 %949, %v1085_v18   ;;  %v1168_v56 = vpop.permute.xlu0 %306 }
  0x90   :  { %v204_v60 = vpop.permute.xlu1 %203  ;;  %584 = vperm.xlu1 %948, %v1078_v17   ;;  %750 = vperm.xlu0 %949, %v922_v57   ;;  %v319_v61 = vpop.permute.xlu0 %318 }
  0x91   :  { %v257_v62 = vmul.f32 %v204_v60, %v1175_v59  ;;  %v372_v63 = vmul.f32 %v319_v61, %v1175_v59 }
  0x93   :  { %v275_v1 = vsel %vm109_vm0, %v257_v62, 0.0  ;;  %v390_v2 = vsel %vm304_vm15, %v372_v63, 0.0  ;;  %v932_v63 = vld [vmem:[%s1618_s2 + $0xb] ss:$0 sm:$0xff] }
  0x94   :  { %v1189_v4 = vadd.f32 %v390_v2, %v275_v1  ;;  %v212_v5 = vpop.permute.xlu1 %211  ;;  %592 = vperm.xlu1 %948, %v1085_v18   ;;  %762 = vperm.xlu0 %949, %v925_v0   ;;  %v327_v6 = vpop.permute.xlu0 %326  ;;  %v929_v18 = vld [vmem:[%s1618_s2 + $0x8] ss:$0 sm:$0xff]  ;;  %v256_v0 = vmul.f32 %v1164_v54, %v1175_v59 }
  0x95   :  { %v259_v7 = vmul.f32 %v212_v5, %v1175_v59  ;;  %v374_v8 = vmul.f32 %v327_v6, %v1175_v59  ;;  %v934_v6 = vld [vmem:[%s1618_s2 + $0xd] ss:$0 sm:$0xff] }
  0x97   :  { %v277_v11 = vsel %vm109_vm0, %v259_v7, 0.0  ;;  %v392_v12 = vsel %vm304_vm15, %v374_v8, 0.0  ;;  %v274_v7 = vsel %vm109_vm0, %v256_v0, 0.0 }
  0x98   :  { %v1204_v13 = vadd.f32 %v392_v12, %v277_v11  ;;  %v220_v14 = vpop.permute.xlu1 %219  ;;  %950 = vset.pattern.permute.xlu1 %v967_v3  ;;  %770 = vperm.xlu0 %949, %v927_v9   ;;  %v335_v15 = vpop.permute.xlu0 %334  ;;  %v936_v11 = vld [vmem:[%s1618_s2 + $0xf] ss:$0 sm:$0xff] }
  0x99   :  { %v261_v16 = vmul.f32 %v220_v14, %v1175_v59  ;;  %v376_v17 = vmul.f32 %v335_v15, %v1175_v59  ;;  %746 = vperm.xlu1 %950, %v921_v10  }
  0x9b   :  { %v279_v20 = vsel %vm109_vm0, %v261_v16, 0.0  ;;  %v394_v3 = vsel %vm304_vm15, %v376_v17, 0.0 }
  0x9c   :  { %v1219_v21 = vadd.f32 %v394_v3, %v279_v20  ;;  %v228_v22 = vpop.permute.xlu1 %227  ;;  %778 = vperm.xlu0 %949, %v929_v18   ;;  %v343_v23 = vpop.permute.xlu0 %342 }
  0x9d   :  { %v263_v24 = vmul.f32 %v228_v22, %v1175_v59  ;;  %v378_v25 = vmul.f32 %v343_v23, %v1175_v59  ;;  %754 = vperm.xlu1 %950, %v923_v19  }
  0x9f   :  { %v281_v28 = vsel %vm109_vm0, %v263_v24, 0.0  ;;  %v396_v29 = vsel %vm304_vm15, %v378_v25, 0.0 }
  0xa0   :  { %v1233_v30 = vadd.f32 %v396_v29, %v281_v28  ;;  %v236_v31 = vpop.permute.xlu1 %235  ;;  %786 = vperm.xlu0 %949, %v931_v26   ;;  %v351_v32 = vpop.permute.xlu0 %350 }
  0xa1   :  { %v265_v33 = vmul.f32 %v236_v31, %v1175_v59  ;;  %v380_v34 = vmul.f32 %v351_v32, %v1175_v59  ;;  %758 = vperm.xlu1 %950, %v924_v27  }
  0xa3   :  { %v283_v37 = vsel %vm109_vm0, %v265_v33, 0.0  ;;  %v398_v38 = vsel %vm304_vm15, %v380_v34, 0.0 }
  0xa4   :  { %v1247_v39 = vadd.f32 %v398_v38, %v283_v37  ;;  %v244_v40 = vpop.permute.xlu1 %243  ;;  %794 = vperm.xlu0 %949, %v933_v35   ;;  %v359_v41 = vpop.permute.xlu0 %358 }
  0xa5   :  { %v267_v42 = vmul.f32 %v244_v40, %v1175_v59  ;;  %v382_v43 = vmul.f32 %v359_v41, %v1175_v59  ;;  %766 = vperm.xlu1 %950, %v926_v36  }
  0xa7   :  { %v285_v46 = vsel %vm109_vm0, %v267_v42, 0.0  ;;  %v400_v47 = vsel %vm304_vm15, %v382_v43, 0.0 }
  0xa8   :  { %v1261_v48 = vadd.f32 %v400_v47, %v285_v46  ;;  %v252_v49 = vpop.permute.xlu1 %251  ;;  %802 = vperm.xlu0 %949, %v935_v44   ;;  %v367_v50 = vpop.permute.xlu0 %366 }
  0xa9   :  { %v269_v51 = vmul.f32 %v252_v49, %v1175_v59  ;;  %v384_v52 = vmul.f32 %v367_v50, %v1175_v59  ;;  %774 = vperm.xlu1 %950, %v928_v45  }
  0xab   :  { %v287_v55 = vsel %vm109_vm0, %v269_v51, 0.0  ;;  %v402_v57 = vsel %vm304_vm15, %v384_v52, 0.0 }
  0xac   :  { %v1272_v60 = vadd.f32 %v402_v57, %v287_v55 }
  0xad   :  { %v1274_v61 = vpop.permute.xlu1 %310  ;;  %782 = vperm.xlu1 %950, %v930_v53   ;;  %v1276_v62 = vpop.permute.xlu0 %425 }
  0xb1   :  { %v315_v1 = vpop.permute.xlu1 %314  ;;  %790 = vperm.xlu1 %950, %v932_v63   ;;  %v1283_v2 = vpop.permute.xlu0 %437 }
  0xb2   :  { %v371_v5 = vmul.f32 %v315_v1, %v1175_v59 }
  0xb4   :  { %v389_v8 = vsel %vm304_vm15, %v371_v5, 0.0 }
  0xb5   :  { %v1293_v9 = vadd.f32 %v389_v8, %v274_v7  ;;  %v1295_v10 = vpop.permute.xlu1 %322  ;;  %798 = vperm.xlu1 %950, %v934_v6   ;;  %v1297_v54 = vpop.permute.xlu0 %445 }
  0xb9   :  { %v1302_v12 = vpop.permute.xlu1 %330  ;;  %806 = vperm.xlu1 %950, %v936_v11   ;;  %v1304_v14 = vpop.permute.xlu0 %453 }
  0xbd   :  { %v1306_v15 = vpop.permute.xlu1 %338  ;;  %v1308_v16 = vpop.permute.xlu0 %461 }
  0xc1   :  { %v1310_v17 = vpop.permute.xlu1 %346  ;;  %v1312_v18 = vpop.permute.xlu0 %469 }
  0xc5   :  { %v1314_v19 = vpop.permute.xlu1 %354  ;;  %v1316_v20 = vpop.permute.xlu0 %477 }
  0xc9   :  { %v1318_v3 = vpop.permute.xlu1 %362 }
  0xca   :  { %v537_v22 = vpop.permute.xlu0 %536 }
  0xce   :  { %v422_v23 = vpop.permute.xlu1 %421  ;;  %v549_v24 = vpop.permute.xlu0 %548 }
  0xcf   :  { %v602_v27 = vmul.f32 %v549_v24, %v1175_v59  ;;  %v369_v24 = vmul.f32 %v1168_v56, %v1175_v59  ;;  %v370_v56 = vmul.f32 %v1274_v61, %v1175_v59 }
  0xd1   :  { %v620_v32 = vsel %vm534_vm1, %v602_v27, 0.0 }
  0xd2   :  { %v1320_v25 = vpop.permute.xlu1 %429  ;;  %v557_v26 = vpop.permute.xlu0 %556 }
  0xd3   :  { %v604_v33 = vmul.f32 %v557_v26, %v1175_v59 }
  0xd5   :  { %v622_v41 = vsel %vm534_vm1, %v604_v33, 0.0 }
  0xd6   :  { %v434_v28 = vpop.permute.xlu1 %433  ;;  %v565_v29 = vpop.permute.xlu0 %564 }
  0xd7   :  { %v487_v31 = vmul.f32 %v434_v28, %v1175_v59  ;;  %v606_v46 = vmul.f32 %v565_v29, %v1175_v59 }
  0xd9   :  { %v505_v34 = vsel %vm419_vm2, %v487_v31, 0.0  ;;  %v624_v53 = vsel %vm534_vm1, %v606_v46, 0.0 }
  0xda   :  { %v521_v35 = vadd.f32 %v505_v34, %v1189_v4  ;;  %v442_v36 = vpop.permute.xlu1 %441  ;;  %v573_v37 = vpop.permute.xlu0 %572 }
  0xdb   :  { %v489_v38 = vmul.f32 %v442_v36, %v1175_v59  ;;  %v599_v36 = vmul.f32 %v537_v22, %v1175_v59 }
  0xdc   :  { %v1333_v40 = vadd.f32 %v620_v32, %v521_v35  ;;  %v484_v32 = vmul.f32 %v422_v23, %v1175_v59  ;;  %v387_v35 = vsel %vm304_vm15, %v369_v24, 0.0 }
  0xdd   :  { %v507_v42 = vsel %vm419_vm2, %v489_v38, 0.0 }
  0xde   :  { %v523_v43 = vadd.f32 %v507_v42, %v1204_v13  ;;  %v450_v44 = vpop.permute.xlu1 %449  ;;  %v581_v45 = vpop.permute.xlu0 %580  ;;  %v608_v13 = vmul.f32 %v573_v37, %v1175_v59  ;;  %v502_v22 = vsel %vm419_vm2, %v484_v32, 0.0 }
  0xdf   :  { %v491_v4 = vmul.f32 %v450_v44, %v1175_v59  ;;  %v610_v6 = vmul.f32 %v581_v45, %v1175_v59  ;;  %v485_v45 = vmul.f32 %v1276_v62, %v1175_v59  ;;  %v617_v62 = vsel %vm534_vm1, %v599_v36, 0.0 }
  0xe0   :  { %v1342_v47 = vadd.f32 %v622_v41, %v523_v43 }
  0xe1   :  { %v509_v49 = vsel %vm419_vm2, %v491_v4, 0.0  ;;  %v628_v27 = vsel %vm534_vm1, %v610_v6, 0.0  ;;  %v388_v4 = vsel %vm304_vm15, %v370_v56, 0.0 }
  0xe2   :  { %v525_v50 = vadd.f32 %v509_v49, %v1219_v21  ;;  %v458_v51 = vpop.permute.xlu1 %457  ;;  %v589_v52 = vpop.permute.xlu0 %588  ;;  %v626_v21 = vsel %vm534_vm1, %v608_v13, 0.0 }
  0xe3   :  { %v493_v55 = vmul.f32 %v458_v51, %v1175_v59  ;;  %v612_v28 = vmul.f32 %v589_v52, %v1175_v59  ;;  %v373_v51 = vmul.f32 %v1295_v10, %v1175_v59  ;;  %v488_v10 = vmul.f32 %v1283_v2, %v1175_v59 }
  0xe4   :  { %v1351_v57 = vadd.f32 %v624_v53, %v525_v50 }
  0xe5   :  { %v511_v63 = vsel %vm419_vm2, %v493_v55, 0.0  ;;  %v630_v41 = vsel %vm534_vm1, %v612_v28, 0.0  ;;  %v506_v2 = vsel %vm419_vm2, %v488_v10, 0.0  ;;  %v490_v28 = vmul.f32 %v1297_v54, %v1175_v59 }
  0xe6   :  { %v527_v0 = vadd.f32 %v511_v63, %v1233_v30  ;;  %v466_v1 = vpop.permute.xlu1 %465  ;;  %v597_v5 = vpop.permute.xlu0 %596  ;;  %v492_v54 = vmul.f32 %v1304_v14, %v1175_v59  ;;  %v494_v14 = vmul.f32 %v1308_v16, %v1175_v59 }
  0xe7   :  { %v495_v7 = vmul.f32 %v466_v1, %v1175_v59  ;;  %v614_v42 = vmul.f32 %v597_v5, %v1175_v59  ;;  %v503_v5 = vsel %vm419_vm2, %v485_v45, 0.0  ;;  %v508_v36 = vsel %vm419_vm2, %v490_v28, 0.0 }
  0xe8   :  { %v1360_v8 = vadd.f32 %v626_v21, %v527_v0  ;;  %v512_v16 = vsel %vm419_vm2, %v494_v14, 0.0 }
  0xe9   :  { %v513_v11 = vsel %vm419_vm2, %v495_v7, 0.0  ;;  %v632_v13 = vsel %vm534_vm1, %v614_v42, 0.0  ;;  %v391_v7 = vsel %vm304_vm15, %v373_v51, 0.0 }
  0xea   :  { %v529_v26 = vadd.f32 %v513_v11, %v1247_v39  ;;  %v474_v30 = vpop.permute.xlu1 %473  ;;  %v375_v11 = vmul.f32 %v1302_v12, %v1175_v59  ;;  %v377_v12 = vmul.f32 %v1306_v15, %v1175_v59  ;;  %v379_v15 = vmul.f32 %v1310_v17, %v1175_v59 }
  0xeb   :  { %v497_v29 = vmul.f32 %v474_v30, %v1175_v59  ;;  %v192_v31 = vpop.permute.xlu0 %191  ;;  %v381_v17 = vmul.f32 %v1314_v19, %v1175_v59 }
  0xec   :  { %v254_v33 = vmul.f32 %v192_v31, %v1175_v59  ;;  %v1373_v34 = vadd.f32 %v628_v27, %v529_v26  ;;  %v393_v32 = vsel %vm304_vm15, %v375_v11, 0.0  ;;  %v498_v11 = vmul.f32 %v1316_v20, %v1175_v59 }
  0xed   :  { %v515_v39 = vsel %vm419_vm2, %v497_v29, 0.0  ;;  %v399_v19 = vsel %vm304_vm15, %v381_v17, 0.0 }
  0xee   :  { %v531_v37 = vadd.f32 %v515_v39, %v1261_v48  ;;  %v272_v23 = vsel %vm109_vm0, %v254_v33, 0.0  ;;  %v482_v38 = vpop.permute.xlu1 %481  ;;  %v516_v20 = vsel %vm419_vm2, %v498_v11, 0.0 }
  0xef   :  { %v403_v61 = vadd.f32 %v387_v35, %v272_v23  ;;  %v499_v43 = vmul.f32 %v482_v38, %v1175_v59  ;;  %v196_v44 = vpop.permute.xlu0 %195  ;;  %v395_v38 = vsel %vm304_vm15, %v377_v12, 0.0 }
  0xf0   :  { %v255_v48 = vmul.f32 %v196_v44, %v1175_v59  ;;  %v1394_v46 = vadd.f32 %v630_v41, %v531_v37  ;;  %v510_v44 = vsel %vm419_vm2, %v492_v54, 0.0 }
  0xf1   :  { %v517_v49 = vsel %vm419_vm2, %v499_v43, 0.0  ;;  %v518_v50 = vadd.f32 %v502_v22, %v403_v61 }
  0xf2   :  { %v533_v52 = vadd.f32 %v517_v49, %v1272_v60  ;;  %v273_v53 = vsel %vm109_vm0, %v255_v48, 0.0  ;;  %v397_v48 = vsel %vm304_vm15, %v379_v15, 0.0 }
  0xf3   :  { %v404_v55 = vadd.f32 %v388_v4, %v273_v53  ;;  %v541_v63 = vpop.permute.xlu1 %540  ;;  %v208_v0 = vpop.permute.xlu0 %207  ;;  %v1409_v1 = vadd.f32 %v617_v62, %v518_v50 }
  0xf4   :  { %v258_v21 = vmul.f32 %v208_v0, %v1175_v59  ;;  %v1416_v60 = vadd.f32 %v632_v13, %v533_v52  ;;  %v600_v49 = vmul.f32 %v541_v63, %v1175_v59  ;;  %v496_v52 = vmul.f32 %v1312_v18, %v1175_v59 }
  0xf5   :  { %v519_v6 = vadd.f32 %v503_v5, %v404_v55  ;;  %v383_v55 = vmul.f32 %v1318_v3, %v1175_v59 }
  0xf6   :  { %v276_v24 = vsel %vm109_vm0, %v258_v21, 0.0  ;;  %v618_v0 = vsel %vm534_vm1, %v600_v49, 0.0 }
  0xf7   :  { %v407_v26 = vadd.f32 %v391_v7, %v276_v24  ;;  %v1424_v30 = vpop.permute.xlu1 %544  ;;  %v216_v27 = vpop.permute.xlu0 %215  ;;  %v514_v7 = vsel %vm419_vm2, %v496_v52, 0.0 }
  0xf8   :  { %v260_v29 = vmul.f32 %v216_v27, %v1175_v59 }
  0xf9   :  { %v522_v31 = vadd.f32 %v506_v2, %v407_v26  ;;  %v401_v26 = vsel %vm304_vm15, %v383_v55, 0.0  ;;  %v634_v2 = vadd.f32 %v618_v0, %v519_v6 }
  0xfa   :  { %v278_v33 = vsel %vm109_vm0, %v260_v29, 0.0 }
  0xfb   :  { %v409_v56 = vadd.f32 %v393_v32, %v278_v33  ;;  %v553_v39 = vpop.permute.xlu1 %552  ;;  %v224_v35 = vpop.permute.xlu0 %223 }
  0xfc   :  { %v262_v37 = vmul.f32 %v224_v35, %v1175_v59  ;;  %v603_v5 = vmul.f32 %v553_v39, %v1175_v59  ;;  %v486_v35 = vmul.f32 %v1320_v25, %v1175_v59 }
  0xfd   :  { %v524_v23 = vadd.f32 %v508_v36, %v409_v56 }
  0xfe   :  { %v280_v41 = vsel %vm109_vm0, %v262_v37, 0.0  ;;  %v621_v28 = vsel %vm534_vm1, %v603_v5, 0.0  ;;  %v504_v25 = vsel %vm419_vm2, %v486_v35, 0.0 }
  0xff   :  { %v411_v42 = vadd.f32 %v395_v38, %v280_v41  ;;  %v561_v61 = vpop.permute.xlu1 %560  ;;  %v232_v43 = vpop.permute.xlu0 %231  ;;  %v637_v54 = vadd.f32 %v621_v28, %v522_v31  ;;  %v1504_v38 = vld [vmem:[%s1619_s3] sm:$0x3f] }
 0x100   :  { %v264_v45 = vmul.f32 %v232_v43, %v1175_v59  ;;  %v605_v29 = vmul.f32 %v561_v61, %v1175_v59 }
 0x101   :  { %v1453_v22 = vadd.f32 %v510_v44, %v411_v42  ;;  %v601_v42 = vmul.f32 %v1424_v30, %v1175_v59 }
 0x102   :  { %v282_v4 = vsel %vm109_vm0, %v264_v45, 0.0  ;;  %v623_v6 = vsel %vm534_vm1, %v605_v29, 0.0 }
 0x103   :  { %v413_v50 = vadd.f32 %v397_v48, %v282_v4  ;;  %v569_v51 = vpop.permute.xlu1 %568  ;;  %v240_v62 = vpop.permute.xlu0 %239  ;;  %v639_v14 = vadd.f32 %v623_v6, %v524_v23  ;;  %v619_v4 = vsel %vm534_vm1, %v601_v42, 0.0 }
 0x104   :  { %v266_v53 = vmul.f32 %v240_v62, %v1175_v59  ;;  %v607_v37 = vmul.f32 %v569_v51, %v1175_v59  ;;  %v520_v51 = vadd.f32 %v504_v25, %v1293_v9 }
 0x105   :  { %v1467_v13 = vadd.f32 %v512_v16, %v413_v50 }
 0x106   :  { %v284_v63 = vsel %vm109_vm0, %v266_v53, 0.0  ;;  %v625_v45 = vsel %vm534_vm1, %v607_v37, 0.0  ;;  %v635_v0 = vadd.f32 %v619_v4, %v520_v51 }
 0x107   :  { %v415_v10 = vadd.f32 %v399_v19, %v284_v63  ;;  %v577_v18 = vpop.permute.xlu1 %576  ;;  %v248_v21 = vpop.permute.xlu0 %247  ;;  %v641_v52 = vadd.f32 %v625_v45, %v1453_v22 }
 0x108   :  { %v268_v24 = vmul.f32 %v248_v21, %v1175_v59  ;;  %v609_v48 = vmul.f32 %v577_v18, %v1175_v59 }
 0x109   :  { %v1483_v3 = vadd.f32 %v514_v7, %v415_v10 }
 0x10a   :  { %v286_v27 = vsel %vm109_vm0, %v268_v24, 0.0  ;;  %v627_v53 = vsel %vm534_vm1, %v609_v48, 0.0 }
 0x10b   :  { %v417_v32 = vadd.f32 %v401_v26, %v286_v27  ;;  %v585_v12 = vpop.permute.xlu1 %584  ;;  %v751_v33 = vpop.permute.xlu0 %750  ;;  %v643_v7 = vadd.f32 %v627_v53, %v1467_v13 }
 0x10c   :  { %v810_v56 = vadd.f32 %v751_v33, %v634_v2  ;;  %v611_v19 = vmul.f32 %v585_v12, %v1175_v59 }
 0x10d   :  { %v1494_v39 = vadd.f32 %v516_v20, %v417_v32 }
 0x10e   :  { %v826_v36 = vmax.f32 %v810_v56, 100.0  ;;  %v629_v11 = vsel %vm534_vm1, %v611_v19, 0.0 }
 0x10f   :  { %v593_v15 = vpop.permute.xlu1 %592  ;;  %v763_v41 = vpop.permute.xlu0 %762  ;;  %v645_v20 = vadd.f32 %v629_v11, %v1483_v3 }
 0x110   :  { %v842_v61 = vmin.f32 %v826_v36, 1000.0  ;;  %v813_v43 = vadd.f32 %v763_v41, %v637_v54  ;;  %v613_v24 = vmul.f32 %v593_v15, %v1175_v59 }
 0x112   :  { %v859_v31 = vadd.f32 %v1504_v38, %v842_v61  ;;  %v829_v44 = vmax.f32 %v813_v43, 100.0  ;;  %v631_v56 = vsel %vm534_vm1, %v613_v24, 0.0 }
 0x113   :  { %v771_v17 = vpop.permute.xlu0 %770  ;;  %v647_v42 = vadd.f32 %v631_v56, %v1494_v39 }
 0x114   :  { %876 = vst.msk [vmem:[%s1620_s4 + $0x8] sm:$0x3f] %vm874_vm3, %v859_v31  ;;  %v845_v30 = vmin.f32 %v829_v44, 1000.0  ;;  %v815_v49 = vadd.f32 %v771_v17, %v639_v14  ;;  %v747_v50 = vpop.permute.xlu1 %746 }
 0x115   :  { %v809_v23 = vadd.f32 %v747_v50, %v1409_v1 }
 0x116   :  { %v862_v62 = vadd.f32 %v1504_v38, %v845_v30  ;;  %v831_v16 = vmax.f32 %v815_v49, 100.0 }
 0x117   :  { %v825_v55 = vmax.f32 %v809_v23, 100.0  ;;  %v779_v63 = vpop.permute.xlu0 %778 }
 0x118   :  { %879 = vst.msk [vmem:[%s1620_s4 + $0x20] sm:$0x3f] %vm874_vm3, %v862_v62  ;;  %v847_v9 = vmin.f32 %v831_v16, 1000.0  ;;  %v817_v1 = vadd.f32 %v779_v63, %v641_v52  ;;  %v755_v5 = vpop.permute.xlu1 %754 }
 0x119   :  { %v841_v10 = vmin.f32 %v825_v55, 1000.0  ;;  %v811_v18 = vadd.f32 %v755_v5, %v635_v0 }
 0x11a   :  { %v864_v22 = vadd.f32 %v1504_v38, %v847_v9  ;;  %v833_v21 = vmax.f32 %v817_v1, 100.0 }
 0x11b   :  { %v858_v26 = vadd.f32 %v1504_v38, %v841_v10  ;;  %v827_v27 = vmax.f32 %v811_v18, 100.0  ;;  %v787_v2 = vpop.permute.xlu0 %786 }
 0x11c   :  { %881 = vst.msk [vmem:[%s1620_s4 + $0x30] sm:$0x3f] %vm874_vm3, %v864_v22  ;;  %v849_v28 = vmin.f32 %v833_v21, 1000.0  ;;  %v819_v29 = vadd.f32 %v787_v2, %v643_v7  ;;  %v759_v32 = vpop.permute.xlu1 %758 }
 0x11d   :  { %875 = vst.msk [vmem:[%s1620_s4] sm:$0x3f] %vm874_vm3, %v858_v26  ;;  %v843_v13 = vmin.f32 %v827_v27, 1000.0  ;;  %v812_v59 = vadd.f32 %v759_v32, %v1333_v40 }
 0x11e   :  { %v866_v12 = vadd.f32 %v1504_v38, %v849_v28  ;;  %v835_v33 = vmax.f32 %v819_v29, 100.0 }
 0x11f   :  { %v860_v35 = vadd.f32 %v1504_v38, %v843_v13  ;;  %v828_v36 = vmax.f32 %v812_v59, 100.0  ;;  %v795_v54 = vpop.permute.xlu0 %794 }
 0x120   :  { %883 = vst.msk [vmem:[%s1620_s4 + $0x40] sm:$0x3f] %vm874_vm3, %v866_v12  ;;  %v851_v6 = vmin.f32 %v835_v33, 1000.0  ;;  %v821_v37 = vadd.f32 %v795_v54, %v645_v20  ;;  %v767_v40 = vpop.permute.xlu1 %766 }
 0x121   :  { %877 = vst.msk [vmem:[%s1620_s4 + $0x10] sm:$0x3f] %vm874_vm3, %v860_v35  ;;  %v844_v3 = vmin.f32 %v828_v36, 1000.0  ;;  %v814_v58 = vadd.f32 %v767_v40, %v1342_v47 }
 0x122   :  { %v868_v15 = vadd.f32 %v1504_v38, %v851_v6  ;;  %v837_v41 = vmax.f32 %v821_v37, 100.0 }
 0x123   :  { %v861_v61 = vadd.f32 %v1504_v38, %v844_v3  ;;  %v830_v43 = vmax.f32 %v814_v58, 100.0  ;;  %v803_v25 = vpop.permute.xlu0 %802 }
 0x124   :  { %885 = vst.msk [vmem:[%s1620_s4 + $0x50] sm:$0x3f] %vm874_vm3, %v868_v15  ;;  %v853_v31 = vmin.f32 %v837_v41, 1000.0  ;;  %v823_v44 = vadd.f32 %v803_v25, %v647_v42  ;;  %v775_v14 = vpop.permute.xlu1 %774 }
 0x125   :  { %878 = vst.msk [vmem:[%s1620_s4 + $0x18] sm:$0x3f] %vm874_vm3, %v861_v61  ;;  %v846_v47 = vmin.f32 %v830_v43, 1000.0  ;;  %v816_v39 = vadd.f32 %v775_v14, %v1351_v57 }
 0x126   :  { %v870_v45 = vadd.f32 %v1504_v38, %v853_v31  ;;  %v839_v48 = vmax.f32 %v823_v44, 100.0 }
 0x127   :  { %v863_v17 = vadd.f32 %v1504_v38, %v846_v47  ;;  %v832_v4 = vmax.f32 %v816_v39, 100.0 }
 0x128   :  { %887 = vst.msk [vmem:[%s1620_s4 + $0x60] sm:$0x3f] %vm874_vm3, %v870_v45  ;;  %v855_v30 = vmin.f32 %v839_v48, 1000.0  ;;  %v783_v49 = vpop.permute.xlu1 %782 }
 0x129   :  { %880 = vst.msk [vmem:[%s1620_s4 + $0x28] sm:$0x3f] %vm874_vm3, %v863_v17  ;;  %v848_v50 = vmin.f32 %v832_v4, 1000.0  ;;  %v818_v57 = vadd.f32 %v783_v49, %v1360_v8 }
 0x12a   :  { %v872_v51 = vadd.f32 %v1504_v38, %v855_v30 }
 0x12b   :  { %v865_v23 = vadd.f32 %v1504_v38, %v848_v50  ;;  %v834_v62 = vmax.f32 %v818_v57, 100.0 }
 0x12c   :  { %889 = vst.msk [vmem:[%s1620_s4 + $0x70] sm:$0x3f] %vm874_vm3, %v872_v51  ;;  %v791_v16 = vpop.permute.xlu1 %790 }
 0x12d   :  { %882 = vst.msk [vmem:[%s1620_s4 + $0x38] sm:$0x3f] %vm874_vm3, %v865_v23  ;;  %v850_v52 = vmin.f32 %v834_v62, 1000.0  ;;  %v820_v53 = vadd.f32 %v791_v16, %v1373_v34 }
 0x12f   :  { %v867_v8 = vadd.f32 %v1504_v38, %v850_v52  ;;  %v836_v19 = vmax.f32 %v820_v53, 100.0 }
 0x130   :  { %v799_v55 = vpop.permute.xlu1 %798 }
 0x131   :  { %884 = vst.msk [vmem:[%s1620_s4 + $0x48] sm:$0x3f] %vm874_vm3, %v867_v8  ;;  %v852_v63 = vmin.f32 %v836_v19, 1000.0  ;;  %v822_v0 = vadd.f32 %v799_v55, %v1394_v46 }
 0x133   :  { %v869_v9 = vadd.f32 %v1504_v38, %v852_v63  ;;  %v838_v1 = vmax.f32 %v822_v0, 100.0 }
 0x134   :  { %v807_v5 = vpop.permute.xlu1 %806 }
 0x135   :  { %886 = vst.msk [vmem:[%s1620_s4 + $0x58] sm:$0x3f] %vm874_vm3, %v869_v9  ;;  %v854_v34 = vmin.f32 %v838_v1, 1000.0  ;;  %v824_v10 = vadd.f32 %v807_v5, %v1416_v60 }
 0x137   :  { %v871_v18 = vadd.f32 %v1504_v38, %v854_v34  ;;  %v840_v22 = vmax.f32 %v824_v10, 100.0 }
 0x139   :  { %888 = vst.msk [vmem:[%s1620_s4 + $0x68] sm:$0x3f] %vm874_vm3, %v871_v18  ;;  %v856_v46 = vmin.f32 %v840_v22, 1000.0 }
 0x13b   :  { %v873_v21 = vadd.f32 %v1504_v38, %v856_v46 }
 0x13d   :  { %890 = vst.msk [vmem:[%s1620_s4 + $0x78] sm:$0x3f] %vm874_vm3, %v873_v21 }
 0x13e   :  { %895 = vsyncpa [#allocation3], 1 }

</bundles_post_ra>
